<compile_context>
chip_gen: v7x
topology: tpu7x:2x2x1
jax: 0.10.0
libtpu: 0.0.40
codegen_flags: <defaults>
</compile_context>

<pallas_src>
import functools
import math

import jax
import jax.numpy as jnp
from jax.experimental import pallas as pl
from jax.experimental.pallas import tpu as pltpu

# ----------------------------- module configuration --------------------------
QUERY_DIM = 128                       # embed_dim (lane-dense: multiple of 128)
KEY_VALUE_DIM = 64
NUM_HEADS = 4
HEAD_DIM = QUERY_DIM // NUM_HEADS     # 32
SEQ_Q = 8                             # L  (batch_first=False: inputs are (L, N, E))
SEQ_KV = 8                            # S  (== L so the residual mix broadcasts)
BATCH = 2                             # N
QUERY_WEIGHT = 0.3
KEY_VALUE_WEIGHT = 0.3


# ------------------------------- Pallas kernel --------------------------------
def cross_attention_kernel(q_ref, kv_ref, w_adj_ref, b_adj_ref, w_q_ref, b_q_ref,
                           w_kv_ref, b_kv_ref, w_o_ref, b_o_ref, out_ref, *,
                           embed_dim, n_heads, n_batch, n_q_rows,
                           query_weight, key_value_weight):
  """Whole CrossAttention forward, fused; activations stay in VMEM/vregs.

  Row layout: q rows are the free flatten of (L, N, E) -> (L*N, E), i.e. row
  index = l*N + n; kv rows likewise (s*N + n).  Batch separation is enforced
  with a static block-diagonal mask (row % N == col % N) on the score matrix.
  """
  e = embed_dim
  hd = e // n_heads
  f32 = jnp.float32
  bf16 = jnp.bfloat16

  q_in = q_ref[...]                                  # (L*N, E)    f32
  kv_in = kv_ref[...]                                # (S*N, Ekv)  f32
  q_in_bf = q_in.astype(bf16)                        # MXU operands only
  kv_in_bf = kv_in.astype(bf16)

  # Residual branch: kv_adj (independent of kv_proj thanks to the w_adj fold).
  kv_adj = jnp.dot(kv_in_bf, w_adj_ref[...],
                   preferred_element_type=f32) + b_adj_ref[...]        # (S*N, E)

  # In-projections.  w_q already carries 1/sqrt(hd); w_kv is the fused
  # (w_adj_t @ [w_k_t | w_v_t]) so kv_proj reads straight from kv_in.
  q_proj = jnp.dot(q_in_bf, w_q_ref[...],
                   preferred_element_type=f32) + b_q_ref[...]          # (L*N, E)
  kv_proj = jnp.dot(kv_in_bf, w_kv_ref[...],
                    preferred_element_type=f32) + b_kv_ref[...]        # (S*N, 2E)
  k_proj = kv_proj[:, :e]                            # 128-aligned lane slices
  v_proj = kv_proj[:, e:]

  q_bf = q_proj.astype(bf16)                         # (L*N, E)
  v_bf = v_proj.astype(bf16)                         # (S*N, E)
  k_t = jnp.transpose(k_proj).astype(bf16)           # (E, S*N) — ONE transpose

  # Per-head scores stacked along sublanes: (H * L*N, S*N).
  scores = jnp.concatenate(
      [jnp.dot(q_bf[:, h * hd:(h + 1) * hd],         # (L*N, hd)
               k_t[h * hd:(h + 1) * hd, :],          # (hd, S*N) sublane slice
               preferred_element_type=f32)
       for h in range(n_heads)], axis=0)

  # Block-diagonal batch mask for the interleaved (token, batch) row order.
  row = jax.lax.broadcasted_iota(jnp.int32, scores.shape, 0)
  col = jax.lax.broadcasted_iota(jnp.int32, scores.shape, 1)
  scores = jnp.where((row % n_batch) == (col % n_batch), scores, -1e30)

  # ONE softmax over the whole stack (all heads, all batches), f32 math.
  m = jnp.max(scores, axis=-1, keepdims=True)
  p = jnp.exp(scores - m)
  denom = jnp.sum(p, axis=-1, keepdims=True)
  p = (p * pl.reciprocal(denom, approx=True)).astype(bf16)   # (H*L*N, S*N)

  # Attention output accumulated directly into the (pre-scaled) out-projection:
  # attn = b_o + sum_h (p_h @ v_h) @ w_o[h*hd:(h+1)*hd, :].
  attn = b_o_ref[...]                                         # (1, E) f32
  for h in range(n_heads):
    head = jnp.dot(p[h * n_q_rows:(h + 1) * n_q_rows, :],     # (L*N, S*N)
                   v_bf[:, h * hd:(h + 1) * hd],              # (S*N, hd)
                   preferred_element_type=f32)                # (L*N, hd)
    attn = attn + jnp.dot(head.astype(bf16),
                          w_o_ref[pl.ds(h * hd, hd), :],      # (hd, E) ref view
                          preferred_element_type=f32)         # (L*N, E)

  # Weighted residual mix (f32).  (1 - qw - kw) is already folded into w_o/b_o.
  out_ref[...] = (query_weight * q_in + key_value_weight * kv_adj + attn
                  ).astype(out_ref.dtype)


# ------------------------------- wrapper --------------------------------------
def cross_attention_forward(query, key_value, kparams, *, num_heads,
                            query_weight, key_value_weight):
  """query: (L, N, E), key_value: (S, N, Ekv) -> (L, N, E)  (PyTorch layout)."""
  l, n, e = query.shape
  s, n2, ekv = key_value.shape
  # Same constraints the PyTorch module implicitly requires for its residual
  # mix (and no attn_mask / key_padding_mask / dropout are supported).
  assert n2 == n and s == l and e % num_heads == 0

  # Only FREE reshapes (merge leading dims); no transposes in the wrapper.
  q2 = query.reshape(l * n, e)
  kv2 = key_value.reshape(s * n, ekv)

  kernel = functools.partial(
      cross_attention_kernel,
      embed_dim=e, n_heads=num_heads, n_batch=n, n_q_rows=l * n,
      query_weight=query_weight, key_value_weight=key_value_weight)

  vmem_spec = pl.BlockSpec(memory_space=pltpu.MemorySpace.VMEM)
  out = pl.pallas_call(
      kernel,
      out_shape=jax.ShapeDtypeStruct((l * n, e), jnp.float32),
      in_specs=[vmem_spec] * 10,
      out_specs=vmem_spec,
  )(q2, kv2,
    kparams['w_adj_t'], kparams['b_adj'],
    kparams['w_q_t'], kparams['b_q'],
    kparams['w_kv_t'], kparams['b_kv'],
    kparams['w_o_t'], kparams['b_o'])

  return out.reshape(l, n, e)            # free reshape back to (L, N, E)


# ------------------------------- parameters -----------------------------------
def init_params(key):
  """PyTorch-layout weights, plus the kernel-ready (folded, bf16) set."""
  ks = jax.random.split(key, 6)
  sc = 0.05
  w_adj = sc * jax.random.normal(ks[0], (QUERY_DIM, KEY_VALUE_DIM), jnp.float32)
  b_adj = sc * jax.random.normal(ks[1], (QUERY_DIM,), jnp.float32)
  in_w = sc * jax.random.normal(ks[2], (3 * QUERY_DIM, QUERY_DIM), jnp.float32)
  in_b = sc * jax.random.normal(ks[3], (3 * QUERY_DIM,), jnp.float32)
  out_w = sc * jax.random.normal(ks[4], (QUERY_DIM, QUERY_DIM), jnp.float32)
  out_b = sc * jax.random.normal(ks[5], (QUERY_DIM,), jnp.float32)
  torch_params = dict(w_adj=w_adj, b_adj=b_adj, in_w=in_w, in_b=in_b,
                      out_w=out_w, out_b=out_b)

  # One-time offline folds (frozen weights):
  #   * transpose to (in, out) lane-dense layout
  #   * fuse k|v and fold w_adj into the fused k/v projection
  #   * fold 1/sqrt(head_dim) into the q projection
  #   * fold the residual scale (1 - qw - kw) into the out projection
  #   * cast MXU weight operands to bf16 (biases stay f32)
  hd = QUERY_DIM // NUM_HEADS
  scale = 1.0 / math.sqrt(hd)
  attn_w = 1.0 - QUERY_WEIGHT - KEY_VALUE_WEIGHT
  wq, wk, wv = jnp.split(in_w, 3, axis=0)
  bq, bk, bv = jnp.split(in_b, 3)
  hi = jax.lax.Precision.HIGHEST
  w_adj_t = w_adj.T                                           # (Ekv, E)
  w_kv_t = jnp.concatenate([wk.T, wv.T], axis=1)              # (E, 2E)
  b_kv = jnp.concatenate([bk, bv])                            # (2E,)
  w_kv_fused = jnp.dot(w_adj_t, w_kv_t, precision=hi)         # (Ekv, 2E)
  b_kv_fused = jnp.dot(b_adj, w_kv_t, precision=hi) + b_kv    # (2E,)

  kernel_params = dict(
      w_adj_t=w_adj_t.astype(jnp.bfloat16),                   # (Ekv, E)
      b_adj=b_adj.reshape(1, QUERY_DIM),
      w_q_t=(wq.T * scale).astype(jnp.bfloat16),              # (E, E)  scaled
      b_q=(bq * scale).reshape(1, QUERY_DIM),
      w_kv_t=w_kv_fused.astype(jnp.bfloat16),                 # (Ekv, 2E) fused
      b_kv=b_kv_fused.reshape(1, 2 * QUERY_DIM),
      w_o_t=(out_w.T * attn_w).astype(jnp.bfloat16),          # (E, E)  scaled
      b_o=(out_b * attn_w).reshape(1, QUERY_DIM),
  )
  return torch_params, kernel_params


# ------------------------------- pure-JAX reference ---------------------------
def reference_forward(query, key_value, tp, *, num_heads, query_weight,
                      key_value_weight):
  l, n, e = query.shape
  s = key_value.shape[0]
  hd = e // num_heads
  kv_adj = key_value @ tp['w_adj'].T + tp['b_adj']
  wq, wk, wv = jnp.split(tp['in_w'], 3, axis=0)
  bq, bk, bv = jnp.split(tp['in_b'], 3)
  q = query @ wq.T + bq
  k = kv_adj @ wk.T + bk
  v = kv_adj @ wv.T + bv
  q = q.reshape(l, n * num_heads, hd).transpose(1, 0, 2) * (hd ** -0.5)
  k = k.reshape(s, n * num_heads, hd).transpose(1, 0, 2)
  v = v.reshape(s, n * num_heads, hd).transpose(1, 0, 2)
  attn = jax.nn.softmax(jnp.einsum('bld,bsd->bls', q, k), axis=-1)
  out = jnp.einsum('bls,bsd->bld', attn, v)
  out = out.transpose(1, 0, 2).reshape(l, n, e)
  out = out @ tp['out_w'].T + tp['out_b']
  return (query_weight * query + key_value_weight * kv_adj
          + (1.0 - query_weight - key_value_weight) * out)


# ------------------------------- main ------------------------------------------
if __name__ == "__main__":
  root = jax.random.PRNGKey(0)
  k_params, k_q, k_kv = jax.random.split(root, 3)
  torch_params, kernel_params = init_params(k_params)

  query = jax.random.normal(k_q, (SEQ_Q, BATCH, QUERY_DIM), jnp.float32)
  key_value = jax.random.normal(k_kv, (SEQ_KV, BATCH, KEY_VALUE_DIM), jnp.float32)

  fwd = jax.jit(functools.partial(
      cross_attention_forward, num_heads=NUM_HEADS,
      query_weight=QUERY_WEIGHT, key_value_weight=KEY_VALUE_WEIGHT))
  out = jax.block_until_ready(fwd(query, key_value, kernel_params))

  ref = reference_forward(query, key_value, torch_params,
                          num_heads=NUM_HEADS, query_weight=QUERY_WEIGHT,
                          key_value_weight=KEY_VALUE_WEIGHT)

  assert out.shape == (SEQ_Q, BATCH, QUERY_DIM), out.shape
  assert bool(jnp.all(jnp.isfinite(out)))
  # Tolerance is loose deliberately: MXU operands are bf16 (review item 7).
  assert bool(jnp.allclose(out, ref, atol=1e-2, rtol=1e-2)), \
      float(jnp.max(jnp.abs(out - ref)))
  print("KERNEL_OK")
</pallas_src>

<mosaic_0001>
module attributes {stable_mosaic.version = 11 : i64} {
  func.func @cross_attention_kernel(%arg0: memref<16x128xf32, #tpu.memory_space<vmem>>, %arg1: memref<16x64xf32, #tpu.memory_space<vmem>>, %arg2: memref<64x128xbf16, #tpu.memory_space<vmem>>, %arg3: memref<1x128xf32, #tpu.memory_space<vmem>>, %arg4: memref<128x128xbf16, #tpu.memory_space<vmem>>, %arg5: memref<1x128xf32, #tpu.memory_space<vmem>>, %arg6: memref<64x256xbf16, #tpu.memory_space<vmem>>, %arg7: memref<1x256xf32, #tpu.memory_space<vmem>>, %arg8: memref<128x128xbf16, #tpu.memory_space<vmem>>, %arg9: memref<1x128xf32, #tpu.memory_space<vmem>>, %arg10: memref<16x128xf32, #tpu.memory_space<vmem>>) attributes {dimension_semantics = [], scalar_prefetch = 0 : i64, scratch_operands = 0 : i64, tpu.core_type = #tpu.core_type<tc>} {
    %c0 = arith.constant 0 : index
    %c0_0 = arith.constant 0 : index
    %0 = vector.load %arg0[%c0, %c0_0] : memref<16x128xf32, #tpu.memory_space<vmem>>, vector<16x128xf32>
    %c0_1 = arith.constant 0 : index
    %c0_2 = arith.constant 0 : index
    %1 = vector.load %arg1[%c0_1, %c0_2] : memref<16x64xf32, #tpu.memory_space<vmem>>, vector<16x64xf32>
    %2 = arith.truncf %0 : vector<16x128xf32> to vector<16x128xbf16>
    %3 = arith.truncf %1 : vector<16x64xf32> to vector<16x64xbf16>
    %c0_3 = arith.constant 0 : index
    %c0_4 = arith.constant 0 : index
    %4 = vector.load %arg2[%c0_3, %c0_4] : memref<64x128xbf16, #tpu.memory_space<vmem>>, vector<64x128xbf16>
    %cst = arith.constant dense<0.000000e+00> : vector<16x128xf32>
    %5 = tpu.matmul %3, %4, %cst {dimension_numbers = #tpu.dot_dimension_numbers<[1], [0], [0], [1], [0, 0, 1, 1], [], []>} : vector<16x64xbf16>, vector<64x128xbf16>, vector<16x128xf32> -> vector<16x128xf32>
    %c0_5 = arith.constant 0 : index
    %c0_6 = arith.constant 0 : index
    %6 = vector.load %arg3[%c0_5, %c0_6] : memref<1x128xf32, #tpu.memory_space<vmem>>, vector<1x128xf32>
    %7 = vector.broadcast %6 : vector<1x128xf32> to vector<16x128xf32>
    %8 = arith.addf %5, %7 : vector<16x128xf32>
    %c0_7 = arith.constant 0 : index
    %c0_8 = arith.constant 0 : index
    %9 = vector.load %arg4[%c0_7, %c0_8] : memref<128x128xbf16, #tpu.memory_space<vmem>>, vector<128x128xbf16>
    %cst_9 = arith.constant dense<0.000000e+00> : vector<16x128xf32>
    %10 = tpu.matmul %2, %9, %cst_9 {dimension_numbers = #tpu.dot_dimension_numbers<[1], [0], [0], [1], [0, 0, 1, 1], [], []>} : vector<16x128xbf16>, vector<128x128xbf16>, vector<16x128xf32> -> vector<16x128xf32>
    %c0_10 = arith.constant 0 : index
    %c0_11 = arith.constant 0 : index
    %11 = vector.load %arg5[%c0_10, %c0_11] : memref<1x128xf32, #tpu.memory_space<vmem>>, vector<1x128xf32>
    %12 = vector.broadcast %11 : vector<1x128xf32> to vector<16x128xf32>
    %13 = arith.addf %10, %12 : vector<16x128xf32>
    %c0_12 = arith.constant 0 : index
    %c0_13 = arith.constant 0 : index
    %14 = vector.load %arg6[%c0_12, %c0_13] : memref<64x256xbf16, #tpu.memory_space<vmem>>, vector<64x256xbf16>
    %cst_14 = arith.constant dense<0.000000e+00> : vector<16x256xf32>
    %15 = tpu.matmul %3, %14, %cst_14 {dimension_numbers = #tpu.dot_dimension_numbers<[1], [0], [0], [1], [0, 0, 1, 1], [], []>} : vector<16x64xbf16>, vector<64x256xbf16>, vector<16x256xf32> -> vector<16x256xf32>
    %c0_15 = arith.constant 0 : index
    %c0_16 = arith.constant 0 : index
    %16 = vector.load %arg7[%c0_15, %c0_16] : memref<1x256xf32, #tpu.memory_space<vmem>>, vector<1x256xf32>
    %17 = vector.broadcast %16 : vector<1x256xf32> to vector<16x256xf32>
    %18 = arith.addf %15, %17 : vector<16x256xf32>
    %19 = vector.extract_strided_slice %18 {offsets = [0, 0], sizes = [16, 128], strides = [1, 1]} : vector<16x256xf32> to vector<16x128xf32>
    %20 = vector.extract_strided_slice %18 {offsets = [0, 128], sizes = [16, 128], strides = [1, 1]} : vector<16x256xf32> to vector<16x128xf32>
    %21 = arith.truncf %13 : vector<16x128xf32> to vector<16x128xbf16>
    %22 = arith.truncf %20 : vector<16x128xf32> to vector<16x128xbf16>
    %23 = tpu.transpose %19, [1, 0] : vector<16x128xf32> -> vector<128x16xf32>
    %24 = arith.truncf %23 : vector<128x16xf32> to vector<128x16xbf16>
    %25 = vector.extract_strided_slice %21 {offsets = [0, 0], sizes = [16, 32], strides = [1, 1]} : vector<16x128xbf16> to vector<16x32xbf16>
    %26 = vector.extract_strided_slice %24 {offsets = [0, 0], sizes = [32, 16], strides = [1, 1]} : vector<128x16xbf16> to vector<32x16xbf16>
    %cst_17 = arith.constant dense<0.000000e+00> : vector<16x16xf32>
    %27 = tpu.matmul %25, %26, %cst_17 {dimension_numbers = #tpu.dot_dimension_numbers<[1], [0], [0], [1], [0, 0, 1, 1], [], []>} : vector<16x32xbf16>, vector<32x16xbf16>, vector<16x16xf32> -> vector<16x16xf32>
    %28 = vector.extract_strided_slice %21 {offsets = [0, 32], sizes = [16, 32], strides = [1, 1]} : vector<16x128xbf16> to vector<16x32xbf16>
    %29 = vector.extract_strided_slice %24 {offsets = [32, 0], sizes = [32, 16], strides = [1, 1]} : vector<128x16xbf16> to vector<32x16xbf16>
    %cst_18 = arith.constant dense<0.000000e+00> : vector<16x16xf32>
    %30 = tpu.matmul %28, %29, %cst_18 {dimension_numbers = #tpu.dot_dimension_numbers<[1], [0], [0], [1], [0, 0, 1, 1], [], []>} : vector<16x32xbf16>, vector<32x16xbf16>, vector<16x16xf32> -> vector<16x16xf32>
    %31 = vector.extract_strided_slice %21 {offsets = [0, 64], sizes = [16, 32], strides = [1, 1]} : vector<16x128xbf16> to vector<16x32xbf16>
    %32 = vector.extract_strided_slice %24 {offsets = [64, 0], sizes = [32, 16], strides = [1, 1]} : vector<128x16xbf16> to vector<32x16xbf16>
    %cst_19 = arith.constant dense<0.000000e+00> : vector<16x16xf32>
    %33 = tpu.matmul %31, %32, %cst_19 {dimension_numbers = #tpu.dot_dimension_numbers<[1], [0], [0], [1], [0, 0, 1, 1], [], []>} : vector<16x32xbf16>, vector<32x16xbf16>, vector<16x16xf32> -> vector<16x16xf32>
    %34 = vector.extract_strided_slice %21 {offsets = [0, 96], sizes = [16, 32], strides = [1, 1]} : vector<16x128xbf16> to vector<16x32xbf16>
    %35 = vector.extract_strided_slice %24 {offsets = [96, 0], sizes = [32, 16], strides = [1, 1]} : vector<128x16xbf16> to vector<32x16xbf16>
    %cst_20 = arith.constant dense<0.000000e+00> : vector<16x16xf32>
    %36 = tpu.matmul %34, %35, %cst_20 {dimension_numbers = #tpu.dot_dimension_numbers<[1], [0], [0], [1], [0, 0, 1, 1], [], []>} : vector<16x32xbf16>, vector<32x16xbf16>, vector<16x16xf32> -> vector<16x16xf32>
    %37 = tpu.concatenate %27, %30, %33, %36 in 0 : vector<16x16xf32>, vector<16x16xf32>, vector<16x16xf32>, vector<16x16xf32> -> vector<64x16xf32>
    %38 = tpu.iota {dimensions = array<i32: 0>} : vector<64x16xi32>
    %39 = tpu.iota {dimensions = array<i32: 1>} : vector<64x16xi32>
    %c2_i32 = arith.constant 2 : i32
    %c0_i32 = arith.constant 0 : i32
    %40 = arith.cmpi eq, %c2_i32, %c0_i32 : i32
    %c1_i32 = arith.constant 1 : i32
    %41 = arith.select %40, %c1_i32, %c2_i32 : i32
    %42 = vector.broadcast %41 : i32 to vector<64x16xi32>
    %43 = arith.remsi %38, %42 : vector<64x16xi32>
    %c0_i32_21 = arith.constant 0 : i32
    %44 = vector.broadcast %c0_i32_21 : i32 to vector<64x16xi32>
    %45 = arith.cmpi ne, %43, %44 : vector<64x16xi32>
    %c0_i32_22 = arith.constant 0 : i32
    %46 = vector.broadcast %c0_i32_22 : i32 to vector<64x16xi32>
    %47 = arith.cmpi slt, %43, %46 : vector<64x16xi32>
    %c0_i32_23 = arith.constant 0 : i32
    %48 = arith.cmpi slt, %41, %c0_i32_23 : i32
    %49 = vector.broadcast %48 : i1 to vector<64x16xi1>
    %50 = vector.broadcast %49 : vector<64x16xi1> to vector<64x16xi1>
    %51 = arith.xori %47, %50 : vector<64x16xi1>
    %52 = arith.andi %51, %45 : vector<64x16xi1>
    %53 = vector.broadcast %41 : i32 to vector<64x16xi32>
    %54 = arith.addi %43, %53 : vector<64x16xi32>
    %55 = arith.select %52, %54, %43 : vector<64x16xi1>, vector<64x16xi32>
    %c2_i32_24 = arith.constant 2 : i32
    %c0_i32_25 = arith.constant 0 : i32
    %56 = arith.cmpi eq, %c2_i32_24, %c0_i32_25 : i32
    %c1_i32_26 = arith.constant 1 : i32
    %57 = arith.select %56, %c1_i32_26, %c2_i32_24 : i32
    %58 = vector.broadcast %57 : i32 to vector<64x16xi32>
    %59 = arith.remsi %39, %58 : vector<64x16xi32>
    %c0_i32_27 = arith.constant 0 : i32
    %60 = vector.broadcast %c0_i32_27 : i32 to vector<64x16xi32>
    %61 = arith.cmpi ne, %59, %60 : vector<64x16xi32>
    %c0_i32_28 = arith.constant 0 : i32
    %62 = vector.broadcast %c0_i32_28 : i32 to vector<64x16xi32>
    %63 = arith.cmpi slt, %59, %62 : vector<64x16xi32>
    %c0_i32_29 = arith.constant 0 : i32
    %64 = arith.cmpi slt, %57, %c0_i32_29 : i32
    %65 = vector.broadcast %64 : i1 to vector<64x16xi1>
    %66 = vector.broadcast %65 : vector<64x16xi1> to vector<64x16xi1>
    %67 = arith.xori %63, %66 : vector<64x16xi1>
    %68 = arith.andi %67, %61 : vector<64x16xi1>
    %69 = vector.broadcast %57 : i32 to vector<64x16xi32>
    %70 = arith.addi %59, %69 : vector<64x16xi32>
    %71 = arith.select %68, %70, %59 : vector<64x16xi1>, vector<64x16xi32>
    %72 = arith.cmpi eq, %55, %71 : vector<64x16xi32>
    %cst_30 = arith.constant -1.000000e+30 : f32
    %73 = vector.broadcast %cst_30 : f32 to vector<64x16xf32>
    %74 = arith.select %72, %37, %73 : vector<64x16xi1>, vector<64x16xf32>
    %cst_31 = arith.constant dense<0xFF800000> : vector<64xf32>
    %75 = vector.multi_reduction <maximumf>, %74, %cst_31 [1] : vector<64x16xf32> to vector<64xf32>
    %76 = vector.shape_cast %75 : vector<64xf32> to vector<64x1xf32>
    %77 = vector.broadcast %76 : vector<64x1xf32> to vector<64x16xf32>
    %78 = arith.subf %74, %77 : vector<64x16xf32>
    %79 = math.exp %78 : vector<64x16xf32>
    %cst_32 = arith.constant dense<0.000000e+00> : vector<64xf32>
    %80 = vector.multi_reduction <add>, %79, %cst_32 [1] : vector<64x16xf32> to vector<64xf32>
    %81 = vector.shape_cast %80 : vector<64xf32> to vector<64x1xf32>
    %82 = tpu.reciprocal %81 {approx = true} : vector<64x1xf32> -> vector<64x1xf32>
    %83 = vector.broadcast %82 : vector<64x1xf32> to vector<64x16xf32>
    %84 = arith.mulf %79, %83 : vector<64x16xf32>
    %85 = arith.truncf %84 : vector<64x16xf32> to vector<64x16xbf16>
    %c0_33 = arith.constant 0 : index
    %c0_34 = arith.constant 0 : index
    %86 = vector.load %arg9[%c0_33, %c0_34] : memref<1x128xf32, #tpu.memory_space<vmem>>, vector<1x128xf32>
    %87 = vector.extract_strided_slice %85 {offsets = [0, 0], sizes = [16, 16], strides = [1, 1]} : vector<64x16xbf16> to vector<16x16xbf16>
    %88 = vector.extract_strided_slice %22 {offsets = [0, 0], sizes = [16, 32], strides = [1, 1]} : vector<16x128xbf16> to vector<16x32xbf16>
    %cst_35 = arith.constant dense<0.000000e+00> : vector<16x32xf32>
    %89 = tpu.matmul %87, %88, %cst_35 {dimension_numbers = #tpu.dot_dimension_numbers<[1], [0], [0], [1], [0, 0, 1, 1], [], []>} : vector<16x16xbf16>, vector<16x32xbf16>, vector<16x32xf32> -> vector<16x32xf32>
    %90 = arith.truncf %89 : vector<16x32xf32> to vector<16x32xbf16>
    %c0_36 = arith.constant 0 : index
    %c0_37 = arith.constant 0 : index
    %91 = vector.load %arg8[%c0_36, %c0_37] : memref<128x128xbf16, #tpu.memory_space<vmem>>, vector<32x128xbf16>
    %cst_38 = arith.constant dense<0.000000e+00> : vector<16x128xf32>
    %92 = tpu.matmul %90, %91, %cst_38 {dimension_numbers = #tpu.dot_dimension_numbers<[1], [0], [0], [1], [0, 0, 1, 1], [], []>} : vector<16x32xbf16>, vector<32x128xbf16>, vector<16x128xf32> -> vector<16x128xf32>
    %93 = vector.broadcast %86 : vector<1x128xf32> to vector<16x128xf32>
    %94 = arith.addf %93, %92 : vector<16x128xf32>
    %95 = vector.extract_strided_slice %85 {offsets = [16, 0], sizes = [16, 16], strides = [1, 1]} : vector<64x16xbf16> to vector<16x16xbf16>
    %96 = vector.extract_strided_slice %22 {offsets = [0, 32], sizes = [16, 32], strides = [1, 1]} : vector<16x128xbf16> to vector<16x32xbf16>
    %cst_39 = arith.constant dense<0.000000e+00> : vector<16x32xf32>
    %97 = tpu.matmul %95, %96, %cst_39 {dimension_numbers = #tpu.dot_dimension_numbers<[1], [0], [0], [1], [0, 0, 1, 1], [], []>} : vector<16x16xbf16>, vector<16x32xbf16>, vector<16x32xf32> -> vector<16x32xf32>
    %98 = arith.truncf %97 : vector<16x32xf32> to vector<16x32xbf16>
    %c32 = arith.constant 32 : index
    %c0_40 = arith.constant 0 : index
    %99 = vector.load %arg8[%c32, %c0_40] : memref<128x128xbf16, #tpu.memory_space<vmem>>, vector<32x128xbf16>
    %cst_41 = arith.constant dense<0.000000e+00> : vector<16x128xf32>
    %100 = tpu.matmul %98, %99, %cst_41 {dimension_numbers = #tpu.dot_dimension_numbers<[1], [0], [0], [1], [0, 0, 1, 1], [], []>} : vector<16x32xbf16>, vector<32x128xbf16>, vector<16x128xf32> -> vector<16x128xf32>
    %101 = arith.addf %94, %100 : vector<16x128xf32>
    %102 = vector.extract_strided_slice %85 {offsets = [32, 0], sizes = [16, 16], strides = [1, 1]} : vector<64x16xbf16> to vector<16x16xbf16>
    %103 = vector.extract_strided_slice %22 {offsets = [0, 64], sizes = [16, 32], strides = [1, 1]} : vector<16x128xbf16> to vector<16x32xbf16>
    %cst_42 = arith.constant dense<0.000000e+00> : vector<16x32xf32>
    %104 = tpu.matmul %102, %103, %cst_42 {dimension_numbers = #tpu.dot_dimension_numbers<[1], [0], [0], [1], [0, 0, 1, 1], [], []>} : vector<16x16xbf16>, vector<16x32xbf16>, vector<16x32xf32> -> vector<16x32xf32>
    %105 = arith.truncf %104 : vector<16x32xf32> to vector<16x32xbf16>
    %c64 = arith.constant 64 : index
    %c0_43 = arith.constant 0 : index
    %106 = vector.load %arg8[%c64, %c0_43] : memref<128x128xbf16, #tpu.memory_space<vmem>>, vector<32x128xbf16>
    %cst_44 = arith.constant dense<0.000000e+00> : vector<16x128xf32>
    %107 = tpu.matmul %105, %106, %cst_44 {dimension_numbers = #tpu.dot_dimension_numbers<[1], [0], [0], [1], [0, 0, 1, 1], [], []>} : vector<16x32xbf16>, vector<32x128xbf16>, vector<16x128xf32> -> vector<16x128xf32>
    %108 = arith.addf %101, %107 : vector<16x128xf32>
    %109 = vector.extract_strided_slice %85 {offsets = [48, 0], sizes = [16, 16], strides = [1, 1]} : vector<64x16xbf16> to vector<16x16xbf16>
    %110 = vector.extract_strided_slice %22 {offsets = [0, 96], sizes = [16, 32], strides = [1, 1]} : vector<16x128xbf16> to vector<16x32xbf16>
    %cst_45 = arith.constant dense<0.000000e+00> : vector<16x32xf32>
    %111 = tpu.matmul %109, %110, %cst_45 {dimension_numbers = #tpu.dot_dimension_numbers<[1], [0], [0], [1], [0, 0, 1, 1], [], []>} : vector<16x16xbf16>, vector<16x32xbf16>, vector<16x32xf32> -> vector<16x32xf32>
    %112 = arith.truncf %111 : vector<16x32xf32> to vector<16x32xbf16>
    %c96 = arith.constant 96 : index
    %c0_46 = arith.constant 0 : index
    %113 = vector.load %arg8[%c96, %c0_46] : memref<128x128xbf16, #tpu.memory_space<vmem>>, vector<32x128xbf16>
    %cst_47 = arith.constant dense<0.000000e+00> : vector<16x128xf32>
    %114 = tpu.matmul %112, %113, %cst_47 {dimension_numbers = #tpu.dot_dimension_numbers<[1], [0], [0], [1], [0, 0, 1, 1], [], []>} : vector<16x32xbf16>, vector<32x128xbf16>, vector<16x128xf32> -> vector<16x128xf32>
    %115 = arith.addf %108, %114 : vector<16x128xf32>
    %cst_48 = arith.constant 3.000000e-01 : f32
    %116 = vector.broadcast %cst_48 : f32 to vector<16x128xf32>
    %117 = arith.mulf %116, %0 : vector<16x128xf32>
    %cst_49 = arith.constant 3.000000e-01 : f32
    %118 = vector.broadcast %cst_49 : f32 to vector<16x128xf32>
    %119 = arith.mulf %118, %8 : vector<16x128xf32>
    %120 = arith.addf %117, %119 : vector<16x128xf32>
    %121 = arith.addf %120, %115 : vector<16x128xf32>
    %c0_50 = arith.constant 0 : index
    %c0_51 = arith.constant 0 : index
    %122 = vector.load %arg10[%c0_50, %c0_51] : memref<16x128xf32, #tpu.memory_space<vmem>>, vector<16x128xf32>
    tpu.vector_store %arg10[%c0_50, %c0_51], %121 {strides = array<i32>} : memref<16x128xf32, #tpu.memory_space<vmem>>, vector<16x128xf32>,
    return
  }
}

</mosaic_0001>

<bundles_post_ra>
// kernel: cross_attention_forward.1
= control target key start
LH: loop header
LB: loop body
LE: loop exit
PB: predicated region body
PF: predicated region fallthrough
CT: control target
= control target key end

     0   :  { %15 = vsyncpa [#allocation3], 0  ;;  %s2134_s0 = inlined_call_operand.hbm [shape: f32[16,128], index: 0, kind: input, shape index: {}]   ;;  %s2135_s1 = inlined_call_operand.hbm [shape: f32[16,64], index: 1, kind: input, shape index: {}]   ;;  %s2136_s2 = inlined_call_operand.hbm [shape: bf16[64,128], index: 2, kind: input, shape index: {}]   ;;  %s2137_s3 = inlined_call_operand.vmem [shape: f32[1,128], index: 3, kind: input, shape index: {}]   ;;  %s2138_s4 = inlined_call_operand.hbm [shape: bf16[128,128], index: 4, kind: input, shape index: {}]   ;;  %s2139_s5 = inlined_call_operand.vmem [shape: f32[1,128], index: 5, kind: input, shape index: {}]   ;;  %s2140_s6 = inlined_call_operand.hbm [shape: bf16[64,256], index: 6, kind: input, shape index: {}]   ;;  %s2141_s7 = inlined_call_operand.vmem [shape: f32[1,256], index: 7, kind: input, shape index: {}]   ;;  %s2142_s8 = inlined_call_operand.hbm [shape: bf16[128,128], index: 8, kind: input, shape index: {}]   ;;  %s2143_s9 = inlined_call_operand.vmem [shape: f32[1,128], index: 9, kind: input, shape index: {}]   ;;  %s2144_s10 = inlined_call_operand.hbm [shape: f32[16,128], index: 10, kind: output, shape index: {}]  }
   0x1   :  { %16 = vsyncpa [#allocation6], 0 }
   0x2   :  { %17 = vsyncpa [#allocation9], 0 }
   0x3   :  { %18 = vsyncpa [#allocation12], 0 }
   0x4   :  { %19 = vsyncpa [#allocation4], 0  ;;  %s1808_s13 = smov [#allocation5]   ;;  %s1644_s17 = scalar_lea.hbm %s2135_s1, 256 }
   0x5   :  { %s37_s14 = sshll.u32 %s1808_s13, 4  ;;  %p1645_p0 = scmp.ne.s32.totalorder %s2135_s1, %s1644_s17  ;;  %s38_s14 = int_to_ptr.vmem [resolvable:$true] %s37_s14 }
   0x6   :  { %p1648_p1 = scmp.lt.u32.totalorder %s1644_s17, %s2135_s1 }
   0x8   :  { %p1650_p2 = pnand %p1648_p1, %p1645_p0 }
   0xa   :  { %1653 = shalt.err (!%p1650_p2)
}
   0xb   :  { %s1654_s22 = scalar_lea.vmem %s38_s14, 256  ;;  %p1659_p4 = scmp.lt.s32.totalorder %s38_s14, %s38_s14 }
   0xc   :  { %p1655_p3 = scmp.ne.s32.totalorder %s38_s14, %s1654_s22  ;;  %p1660_p5 = scmp.lt.s32.totalorder %s1654_s22, %s1654_s22 }
   0xe   :  { %p1661_p6 = por %p1660_p5, %p1659_p4 }
  0x10   :  { %p1662_p7 = pnand %p1661_p6, %p1655_p3 }
  0x12   :  { %1665 = shalt.err (!%p1662_p7)
}
  0x13   :  { %s1809_s23 = smov 128   ;;  %s1810_s24 = smov 8  }
  0x14   :  { %43 = dma.hbm_to_vmem [thread:$0]  %s2135_s1, 256, %s38_s14, [#allocation6], %s1809_s23, %s1809_s23, %s1810_s24  }
  0x15   :  { %s1811_s27 = smov [#allocation8]   ;;  %s1812_s29 = smov [#allocation2]  }
  0x16   :  { %s63_s28 = sshll.u32 %s1811_s27, 4  ;;  %s25_s30 = sshll.u32 %s1812_s29, 4  ;;  %s64_s28 = int_to_ptr.vmem [resolvable:$true] %s63_s28  ;;  %s26_s30 = int_to_ptr.vmem [resolvable:$true] %s25_s30 }
  0x17   :  { %s1666_s13 = scalar_lea.hbm %s2138_s4, 1024 }
  0x18   :  { %p1667_p8 = scmp.ne.s32.totalorder %s2138_s4, %s1666_s13  ;;  %p1670_p9 = scmp.lt.u32.totalorder %s1666_s13, %s2138_s4 }
  0x1a   :  { %p1672_p10 = pnand %p1670_p9, %p1667_p8 }
  0x1c   :  { %1675 = shalt.err (!%p1672_p10)
}
  0x1d   :  { %s1676_s1 = scalar_lea.vmem %s64_s28, 1024  ;;  %p1681_p12 = scmp.lt.s32.totalorder %s64_s28, %s64_s28 }
  0x1e   :  { %p1677_p11 = scmp.ne.s32.totalorder %s64_s28, %s1676_s1  ;;  %p1682_p13 = scmp.lt.s32.totalorder %s1676_s1, %s1676_s1 }
  0x20   :  { %p1683_p0 = por %p1682_p13, %p1681_p12 }
  0x22   :  { %p1684_p1 = pnand %p1683_p0, %p1677_p11 }
  0x24   :  { %1687 = shalt.err (!%p1684_p1)
}
  0x25   :  { %s1813_s14 = smov 64   ;;  %s1814_s19 = smov 4  }
  0x26   :  { %69 = dma.hbm_to_vmem [thread:$0]  %s2138_s4, 1024, %s64_s28, [#allocation9], %s1813_s14, %s1813_s14, %s1814_s19  }
  0x27   :  { %s1688_s26 = scalar_lea.hbm %s2134_s0, 256 }
  0x28   :  { %p1689_p2 = scmp.ne.s32.totalorder %s2134_s0, %s1688_s26  ;;  %p1692_p3 = scmp.lt.u32.totalorder %s1688_s26, %s2134_s0 }
  0x2a   :  { %p1694_p4 = pnand %p1692_p3, %p1689_p2 }
  0x2c   :  { %1697 = shalt.err (!%p1694_p4)
}
  0x2d   :  { %s1698_s13 = scalar_lea.vmem %s26_s30, 256  ;;  %p1703_p6 = scmp.lt.s32.totalorder %s26_s30, %s26_s30 }
  0x2e   :  { %p1699_p5 = scmp.ne.s32.totalorder %s26_s30, %s1698_s13  ;;  %p1704_p7 = scmp.lt.s32.totalorder %s1698_s13, %s1698_s13 }
  0x30   :  { %p1705_p8 = por %p1704_p7, %p1703_p6 }
  0x32   :  { %p1706_p9 = pnand %p1705_p8, %p1699_p5 }
  0x34   :  { %1709 = shalt.err (!%p1706_p9)
}
  0x35   :  { %31 = dma.hbm_to_vmem [thread:$0]  %s2134_s0, 256, %s26_s30, [#allocation3], %s1809_s23, %s1809_s23, %s1810_s24  }
  0x36   :  { %s1815_s15 = smov [#allocation7]   ;;  %s1816_s17 = smov [#allocation10]  }
  0x37   :  { %s49_s16 = sshll.u32 %s1815_s15, 4  ;;  %s77_s18 = sshll.u32 %s1816_s17, 4  ;;  %s50_s16 = int_to_ptr.vmem [resolvable:$true] %s49_s16  ;;  %s78_s18 = int_to_ptr.vmem [resolvable:$true] %s77_s18 }
  0x38   :  { %s1710_s21 = scalar_lea.hbm %s2136_s2, 512 }
  0x39   :  { %p1711_p10 = scmp.ne.s32.totalorder %s2136_s2, %s1710_s21  ;;  %p1714_p11 = scmp.lt.u32.totalorder %s1710_s21, %s2136_s2 }
  0x3b   :  { %p1716_p12 = pnand %p1714_p11, %p1711_p10 }
  0x3d   :  { %1719 = shalt.err (!%p1716_p12)
}
  0x3e   :  { %s1720_s0 = scalar_lea.vmem %s50_s16, 512  ;;  %p1725_p0 = scmp.lt.s32.totalorder %s50_s16, %s50_s16 }
  0x3f   :  { %p1721_p13 = scmp.ne.s32.totalorder %s50_s16, %s1720_s0  ;;  %p1726_p1 = scmp.lt.s32.totalorder %s1720_s0, %s1720_s0 }
  0x41   :  { %p1727_p2 = por %p1726_p1, %p1725_p0 }
  0x43   :  { %p1728_p3 = pnand %p1727_p2, %p1721_p13 }
  0x45   :  { %1731 = shalt.err (!%p1728_p3)
}
  0x46   :  { %55 = dma.hbm_to_vmem [thread:$0]  %s2136_s2, 512, %s50_s16, [#allocation6], %s1813_s14, %s1813_s14, %s1814_s19  }
  0x47   :  { %s1732_s13 = scalar_lea.hbm %s2140_s6, 1024 }
  0x48   :  { %p1733_p4 = scmp.ne.s32.totalorder %s2140_s6, %s1732_s13  ;;  %p1736_p5 = scmp.lt.u32.totalorder %s1732_s13, %s2140_s6 }
  0x4a   :  { %p1738_p6 = pnand %p1736_p5, %p1733_p4 }
  0x4c   :  { %1741 = shalt.err (!%p1738_p6)
}
  0x4d   :  { %s1742_s1 = scalar_lea.vmem %s78_s18, 1024  ;;  %p1747_p8 = scmp.lt.s32.totalorder %s78_s18, %s78_s18 }
  0x4e   :  { %p1743_p7 = scmp.ne.s32.totalorder %s78_s18, %s1742_s1  ;;  %p1748_p9 = scmp.lt.s32.totalorder %s1742_s1, %s1742_s1 }
  0x50   :  { %p1749_p10 = por %p1748_p9, %p1747_p8 }
  0x52   :  { %p1750_p11 = pnand %p1749_p10, %p1743_p7 }
  0x54   :  { %1753 = shalt.err (!%p1750_p11)
}
  0x55   :  { %83 = dma.hbm_to_vmem [thread:$0]  %s2140_s6, 1024, %s78_s18, [#allocation9], %s1809_s23, %s1809_s23, %s1810_s24  }
  0x56   :  { %s1817_s20 = smov [#allocation11]   ;;  %s1754_s26 = scalar_lea.hbm %s2142_s8, 1024 }
  0x57   :  { %s91_s21 = sshll.u32 %s1817_s20, 4  ;;  %p1755_p12 = scmp.ne.s32.totalorder %s2142_s8, %s1754_s26  ;;  %s92_s21 = int_to_ptr.vmem [resolvable:$true] %s91_s21 }
  0x58   :  { %p1758_p13 = scmp.lt.u32.totalorder %s1754_s26, %s2142_s8 }
  0x5a   :  { %p1760_p0 = pnand %p1758_p13, %p1755_p12 }
  0x5c   :  { %1763 = shalt.err (!%p1760_p0)
}
  0x5d   :  { %s1764_s11 = scalar_lea.vmem %s92_s21, 1024  ;;  %p1769_p2 = scmp.lt.s32.totalorder %s92_s21, %s92_s21 }
  0x5e   :  { %p1765_p1 = scmp.ne.s32.totalorder %s92_s21, %s1764_s11  ;;  %p1770_p3 = scmp.lt.s32.totalorder %s1764_s11, %s1764_s11 }
  0x60   :  { %p1771_p4 = por %p1770_p3, %p1769_p2 }
  0x62   :  { %p1772_p5 = pnand %p1771_p4, %p1765_p1 }
  0x64   :  { %1775 = shalt.err (!%p1772_p5)
}
  0x65   :  { %97 = dma.hbm_to_vmem [thread:$0]  %s2142_s8, 1024, %s92_s21, [#allocation12], %s1813_s14, %s1813_s14, %s1814_s19  }
  0x66   :  { %1798 = dma.done.wait [#allocation3], 256  }
  0x67   :  { %1799 = vsyncadd [#allocation3], 4294967040 }
  0x68   :  { %1800 = dma.done.wait [#allocation6], 768  }
  0x69   :  { %1801 = vsyncadd [#allocation6], 4294966528 }
  0x6a   :  { %1802 = dma.done.wait [#allocation9], 2048  }
  0x6b   :  { %1803 = vsyncadd [#allocation9], 4294965248 }
  0x6c   :  { %1804 = dma.done.wait [#allocation12], 1024  }
  0x6d   :  { %1805 = vsyncadd [#allocation12], 4294966272  ;;  %v1818_v0 = vmov 0.0   ;;  %vm1819_vm0 = vmmov 0   ;;  %v1580_v1 = vld [vmem:[#allocation8] sm:$0xff]   ;;  %v1581_v2 = vld [vmem:[#allocation8 + $0x8] sm:$0xff]   ;;  %v331_v31 = vlaneseq }
  0x6e   :  { %1456 = vmatprep.subr.bf16.mxu1 %v1818_v0  ;;  %1444 = vmatprep.subr.bf16.mxu0 %v1818_v0  ;;  %v1582_v3 = vld [vmem:[#allocation8 + $0x10] sm:$0xff]   ;;  %v1588_v4 = vld [vmem:[#allocation7] sm:$0xff]   ;;  %v1583_v5 = vld [vmem:[#allocation8 + $0x18] sm:$0xff]   ;;  %vm164_vm1 = vcmask 523264   ;;  %v1820_v23 = vmov 0   ;;  %s1821_s4 = smov 96  }
  0x6f   :  { %1472 = vmatprep.mubr.msk.bf16.mxu1 %vm1819_vm0, %v1818_v0  ;;  %1452 = vmatprep.mubr.msk.bf16.mxu0 %vm1819_vm0, %v1818_v0  ;;  %v1589_v6 = vld [vmem:[#allocation7 + $0x8] sm:$0xff]   ;;  %v1584_v7 = vld [vmem:[#allocation8 + $0x20] sm:$0xff]   ;;  %v1590_v8 = vld [vmem:[#allocation7 + $0x10] sm:$0xff]   ;;  %v2004_v33 = vshrl.u32 %v331_v31, 7  ;;  %vm466_vm2 = vcmask 261120   ;;  %vm785_vm4 = vcmask 130048  }
  0x70   :  { %1457 = vmatpush3.bf16.msra.mxu1 %v1580_v1  ;;  %1445 = vmatpush3.bf16.msra.mxu0 %v1588_v4  ;;  %v1585_v9 = vld [vmem:[#allocation8 + $0x28] sm:$0xff]   ;;  %v1591_v10 = vld [vmem:[#allocation7 + $0x18] sm:$0xff]   ;;  %v121_v12 = vld [vmem:[#allocation5] sm:$0xff] }
  0x71   :  { %1458 = vmatprep.subr.bf16.mxu1 %v1818_v0  ;;  %1446 = vmatprep.subr.bf16.mxu0 %v1818_v0  ;;  %v1594_v11 = vld [vmem:[#allocation10 + $0x4] ss:$8 sps:$4 sm:$0xff]   ;;  %v122_v13 = vld [vmem:[#allocation5 + $0x8] sm:$0xff]  ;;  %v1586_v14 = vld [vmem:[#allocation8 + $0x30] sm:$0xff]   ;;  %v337_v38 = vsub.s32 1, %v2004_v33  ;;  %v333_v52 = vsub.s32 0, %v2004_v33 }
  0x72   :  { %v1592_v15 = vld [vmem:[#allocation10] ss:$8 sps:$4 sm:$0xff]   ;;  %v124_v16 = vpack.c.bf16 %v122_v13, %v121_v12  ;;  %v1597_v17 = vld [vmem:[#allocation10 + $0x14] ss:$8 sps:$4 sm:$0xff]   ;;  %v1595_v21 = vld [vmem:[#allocation10 + $0x10] ss:$8 sps:$4 sm:$0xff]  }
  0x73   :  { %v1587_v18 = vld [vmem:[#allocation8 + $0x38] sm:$0xff]   ;;  %v1985_v19 = vld [vmem:[#allocation2] sm:$0xff]  ;;  %v1987_v20 = vld [vmem:[#allocation2 + $0x8] sm:$0xff] }
  0x74   :  { %1459 = vmatpush3.bf16.msra.mxu1 %v1581_v2  ;;  %1447 = vmatpush3.bf16.msra.mxu0 %v1589_v6  ;;  %v1600_v22 = vld [vmem:[#allocation10 + $0x24] ss:$8 sps:$4 sm:$0xff]   ;;  %v123_v24 = vpack.c.bf16 %v1987_v20, %v1985_v19  ;;  %v1598_v25 = vld [vmem:[#allocation10 + $0x20] ss:$8 sps:$4 sm:$0xff]   ;;  %v1603_v26 = vld [vmem:[#allocation10 + $0x34] ss:$8 sps:$4 sm:$0xff]  }
  0x75   :  { %1460 = vmatprep.subr.bf16.mxu1 %v1818_v0  ;;  %1448 = vmatprep.subr.bf16.mxu0 %v1818_v0  ;;  %v1601_v27 = vld [vmem:[#allocation10 + $0x30] ss:$8 sps:$4 sm:$0xff]   ;;  %v1359_v34 = vld [vmem:[%s2139_s5] ss:$0 sm:$0xff]  ;;  %s1822_s5 = smov 32  }
  0x76   :  { %v329_v42 = vld [vmem:[%s2141_s7] sm:$0x3] }
  0x77   :  { %v338_v44 = vrot.slane %v329_v42, %v337_v38  ;;  %v334_v53 = vrot.slane %v329_v42, %v333_v52  ;;  %v656_v42 = vadd.s32 40, %v2004_v33  ;;  %v653_v52 = vadd.s32 16, %v2004_v33 }
  0x78   :  { %1461 = vmatpush3.bf16.msra.mxu1 %v1582_v3  ;;  %1449 = vmatpush3.bf16.msra.mxu0 %v1590_v8 }
  0x79   :  { %1462 = vmatprep.subr.bf16.mxu1 %v1818_v0  ;;  %1450 = vmatprep.subr.bf16.mxu0 %v1818_v0 }
  0x7c   :  { %1463 = vmatpush3.bf16.msra.mxu1 %v1583_v5  ;;  %1451 = vmatpush3.bf16.msra.mxu0 %v1591_v10 }
  0x7d   :  { %1464 = vmatprep.subr.bf16.mxu1 %v1818_v0  ;;  %381 = vmatprep.subr.bf16.mxu0 %v1594_v11 }
  0x7f   :  { %1453 = vmatmul.mubr.msk.bf16.vlgmr.msra.gmra.mrb[0].mxu0 %vm164_vm1, %v124_v16 }
  0x80   :  { %1465 = vmatpush3.bf16.msra.mxu1 %v1584_v7  ;;  %382 = vmatpush1.bf16.msra.mxu0 %v1592_v15 }
  0x81   :  { %1466 = vmatprep.subr.bf16.mxu1 %v1818_v0  ;;  %383 = vmatprep.subr.bf16.mxu0 %v1597_v17 }
  0x82   :  { %413 = vmatprep.mubr.bf16.mxu0 %v1820_v23  ;;  %v652_v23 = vadd.s32 8, %v2004_v33 }
  0x84   :  { %1467 = vmatpush3.bf16.msra.mxu1 %v1585_v9  ;;  %384 = vmatpush1.bf16.msra.mxu0 %v1595_v21 }
  0x85   :  { %1468 = vmatprep.subr.bf16.mxu1 %v1818_v0  ;;  %385 = vmatprep.subr.bf16.mxu0 %v1600_v22  ;;  %v660_v22 = vand.u32 127, %v331_v31 }
  0x88   :  { %1469 = vmatpush3.bf16.msra.mxu1 %v1586_v14  ;;  %386 = vmatpush1.bf16.msra.mxu0 %v1598_v25  ;;  %v761_v25 = vand.u32 1, %v660_v22 }
  0x89   :  { %1470 = vmatprep.subr.bf16.mxu1 %v1818_v0  ;;  %387 = vmatprep.subr.bf16.mxu0 %v1603_v26  ;;  %v672_v26 = vand.u32 1, %v652_v23 }
  0x8b   :  { %vm770_vm5 = vcmp.eq.s32.totalorder %v672_v26, %v761_v25 }
  0x8c   :  { %1471 = vmatpush3.bf16.msra.mxu1 %v1587_v18  ;;  %388 = vmatpush1.bf16.msra.mxu0 %v1601_v27 }
  0x8d   :  { %1484 = vmatprep.subr.bf16.mxu1 %v1818_v0  ;;  %1476 = vmatprep.subr.bf16.mxu0 %v1818_v0 }
  0x8f   :  { %1473 = vmatmul.mubr.bf16.vlgmr.msra.gmra.mrb[0].mxu1 %v123_v24  ;;  %1376 = vmatmul.mubr.msk.bf16.vlgmr.msra.gmra.mrb[4].mxu0 %vm164_vm1, %v124_v16  ;;  %v665_v24 = vand.u32 1, %v2004_v33 }
  0x90   :  { %1488 = vmatprep.mubr.msk.bf16.mxu1 %vm1819_vm0, %v1818_v0  ;;  %1480 = vmatprep.mubr.msk.bf16.mxu0 %vm1819_vm0, %v1818_v0 }
  0x91   :  { %vm769_vm3 = vcmp.eq.s32.totalorder %v665_v24, %v761_v25 }
 0x152   :  { %v1999_v28 = vpop.f32.mrb[0].mxu0 }
 0x153   :  { %v1454_v29 = vpop.f32.mrb[1].mxu0 }
 0x154   :  { %v2001_v30 = vpop.f32.mrb[2].mxu0 }
 0x155   :  { %v1455_v32 = vpop.f32.mrb[3].mxu0 }
 0x162   :  { %v314_v35 = vpop.f32.mrb[0].mxu1  ;;  %v415_v45 = vpop.f32.mrb[4].mxu0 }
 0x163   :  { %v1474_v36 = vpop.f32.mrb[1].mxu1  ;;  %v315_v39 = vadd.f32 %v1359_v34, %v314_v35  ;;  %v417_v46 = vpop.f32.mrb[5].mxu0  ;;  %v416_v54 = vadd.f32 %v415_v45, %v334_v53 }
 0x164   :  { %v317_v37 = vpop.f32.mrb[2].mxu1  ;;  %v418_v47 = vadd.f32 %v417_v46, %v338_v44  ;;  %v419_v48 = vpop.f32.mrb[6].mxu0 }
 0x165   :  { %v318_v40 = vadd.f32 %v1359_v34, %v317_v37  ;;  %v1475_v41 = vpop.f32.mrb[3].mxu1  ;;  %v421_v49 = vpop.f32.mrb[7].mxu0  ;;  %v420_v55 = vadd.f32 %v419_v48, %v334_v53 }
 0x166   :  { %v422_v50 = vadd.f32 %v421_v49, %v338_v44  ;;  %v657_v49 = vadd.s32 48, %v2004_v33 }
 0x167   :  { %v424_v43 = vpack.c.bf16 %v318_v40, %v315_v39 }
 0x168   :  { %v2016_v51 = vpack.c.bf16 %v422_v50, %v418_v47  ;;  %v658_v50 = vadd.s32 56, %v2004_v33  ;;  %v707_v53 = vand.u32 1, %v657_v49 }
 0x169   :  { %558 = vrot.lane.b32.xlu1 %v424_v43, %s1813_s14  ;;  %512 = vrot.lane.b32.xlu0 %v424_v43, %s1821_s4 }
 0x16a   :  { %vm775_vm7 = vcmp.eq.s32.totalorder %v707_v53, %v761_v25 }
 0x16d   :  { %604 = vrot.lane.b32.xlu1 %v424_v43, %s1822_s5 }
 0x187   :  { %426 = vxpose.xlu0.b32.start [1/2] (short) %v416_v54, 128  ;;  %v714_v54 = vand.u32 1, %v658_v50 }
 0x189   :  { %vm776_vm8 = vcmp.eq.s32.totalorder %v714_v54, %v761_v25 }
 0x18b   :  { %427 = vxpose.xlu0.b32.end [2/2] (short) %v420_v55, 128  ;;  %v679_v55 = vand.u32 1, %v653_v52 }
 0x18d   :  { %vm771_vm9 = vcmp.eq.s32.totalorder %v679_v55, %v761_v25 }
 0x1db   :  { %v513_v56 = vpop.permute.xlu0 %512  ;;  %v559_v13 = vpop.permute.xlu1 %558 }
 0x1df   :  { %v605_v21 = vpop.permute.xlu1 %604 }
 0x207   :  { %v442_v57 = vpop.trf.xlu0 }
 0x20b   :  { %v443_v58 = vpop.trf.xlu0 }
 0x20c   :  { %v458_v59 = vpack.c.bf16 %v443_v58, %v442_v57 }
 0x20e   :  { %1477 = vmatpush3.bf16.msra.mxu0 %v458_v59  ;;  %v655_v59 = vadd.s32 32, %v2004_v33 }
 0x20f   :  { %v444_v60 = vpop.trf.xlu0  ;;  %1478 = vmatprep.subr.bf16.mxu0 %v1818_v0 }
 0x213   :  { %v445_v61 = vpop.trf.xlu0 }
 0x214   :  { %v459_v62 = vpack.c.bf16 %v445_v61, %v444_v60 }
 0x216   :  { %1479 = vmatpush3.bf16.msra.mxu0 %v459_v62 }
 0x217   :  { %v446_v63 = vpop.trf.xlu0  ;;  %1492 = vmatprep.subr.bf16.mxu0 %v1818_v0 }
 0x219   :  { %1481 = vmatmul.mubr.msk.bf16.vlgmr.msra.gmra.mrb[8].mxu0 %vm466_vm2, %v424_v43  ;;  %v700_v43 = vand.u32 1, %v656_v42 }
 0x21a   :  { %1496 = vmatprep.mubr.msk.bf16.mxu0 %vm1819_vm0, %v1818_v0 }
 0x21b   :  { %v447_v1 = vpop.trf.xlu0  ;;  %vm774_vm6 = vcmp.eq.s32.totalorder %v700_v43, %v761_v25 }
 0x21c   :  { %v460_v2 = vpack.c.bf16 %v447_v1, %v446_v63 }
 0x21e   :  { %1485 = vmatpush3.bf16.msra.mxu1 %v460_v2 }
 0x21f   :  { %v448_v3 = vpop.trf.xlu0  ;;  %1486 = vmatprep.subr.bf16.mxu1 %v1818_v0 }
 0x223   :  { %v449_v4 = vpop.trf.xlu0 }
 0x224   :  { %v461_v5 = vpack.c.bf16 %v449_v4, %v448_v3  ;;  %v693_v3 = vand.u32 1, %v655_v59 }
 0x226   :  { %1487 = vmatpush3.bf16.msra.mxu1 %v461_v5  ;;  %vm773_vm11 = vcmp.eq.s32.totalorder %v693_v3, %v761_v25 }
 0x227   :  { %v450_v6 = vpop.trf.xlu0  ;;  %1500 = vmatprep.subr.bf16.mxu1 %v1818_v0 }
 0x229   :  { %1489 = vmatmul.mubr.msk.bf16.vlgmr.msra.gmra.mrb[4].mxu1 %vm466_vm2, %v513_v56  ;;  %v654_v56 = vadd.s32 24, %v2004_v33 }
 0x22a   :  { %1504 = vmatprep.mubr.msk.bf16.mxu1 %vm1819_vm0, %v1818_v0 }
 0x22b   :  { %v451_v7 = vpop.trf.xlu0  ;;  %v686_v58 = vand.u32 1, %v654_v56 }
 0x22c   :  { %v462_v8 = vpack.c.bf16 %v451_v7, %v450_v6 }
 0x22d   :  { %vm772_vm10 = vcmp.eq.s32.totalorder %v686_v58, %v761_v25  ;;  %v1604_v58 = vld [vmem:[#allocation11] sm:$0xff]  }
 0x22e   :  { %1493 = vmatpush3.bf16.msra.mxu0 %v462_v8 }
 0x22f   :  { %v452_v9 = vpop.trf.xlu0  ;;  %1494 = vmatprep.subr.bf16.mxu0 %v1818_v0 }
 0x233   :  { %v453_v10 = vpop.trf.xlu0 }
 0x234   :  { %v463_v11 = vpack.c.bf16 %v453_v10, %v452_v9 }
 0x236   :  { %1495 = vmatpush3.bf16.msra.mxu0 %v463_v11 }
 0x237   :  { %v454_v12 = vpop.trf.xlu0  ;;  %1508 = vmatprep.subr.bf16.mxu0 %v1818_v0 }
 0x239   :  { %1497 = vmatmul.mubr.msk.bf16.vlgmr.msra.gmra.mrb[12].mxu0 %vm466_vm2, %v559_v13 }
 0x23a   :  { %1509 = vmatpush3.bf16.msra.mxu0 %v2016_v51  ;;  %1510 = vmatprep.mubr.msk.bf16.mxu0 %vm1819_vm0, %v1818_v0 }
 0x23b   :  { %v455_v14 = vpop.trf.xlu0  ;;  %1522 = vmatprep.subr.bf16.mxu0 %v1818_v0 }
 0x23c   :  { %v464_v15 = vpack.c.bf16 %v455_v14, %v454_v12 }
 0x23e   :  { %1501 = vmatpush3.bf16.msra.mxu1 %v464_v15 }
 0x23f   :  { %v456_v16 = vpop.trf.xlu0  ;;  %1502 = vmatprep.subr.bf16.mxu1 %v1818_v0 }
 0x243   :  { %v457_v17 = vpop.trf.xlu0 }
 0x244   :  { %v465_v18 = vpack.c.bf16 %v457_v17, %v456_v16 }
 0x246   :  { %1503 = vmatpush3.bf16.msra.mxu1 %v465_v18 }
 0x247   :  { %1514 = vmatprep.subr.bf16.mxu1 %v1818_v0 }
 0x249   :  { %1505 = vmatmul.mubr.msk.bf16.vlgmr.msra.gmra.mrb[8].mxu1 %vm466_vm2, %v605_v21 }
 0x24a   :  { %1518 = vmatprep.mubr.msk.bf16.mxu1 %vm1819_vm0, %v1818_v0  ;;  %1515 = vmatpush3.bf16.msra.mxu1 %v1604_v58 }
 0x24b   :  { %1516 = vmatprep.subr.bf16.mxu1 %v1818_v0 }
 0x2ec   :  { %v504_v27 = vpop.f32.mrb[8].mxu0 }
 0x2ed   :  { %v777_v29 = vsel %vm769_vm3, %v504_v27, -1e+30  ;;  %v1482_v32 = vpop.f32.mrb[9].mxu0 }
 0x2ee   :  { %v507_v34 = vpop.f32.mrb[10].mxu0  ;;  %v786_v35 = vsel %vm785_vm4, %v777_v29, -inf }
 0x2ef   :  { %v778_v36 = vsel %vm770_vm5, %v507_v34, -1e+30  ;;  %787 = vmax.xlane.f32.xlu1 %v786_v35  ;;  %v1483_v37 = vpop.f32.mrb[11].mxu0 }
 0x2f0   :  { %v789_v31 = vsel %vm785_vm4, %v778_v36, -inf }
 0x2f1   :  { %790 = vmax.xlane.f32.xlu0 %v789_v31 }
 0x2fc   :  { %v551_v38 = vpop.f32.mrb[4].mxu1 }
 0x2fd   :  { %v1490_v39 = vpop.f32.mrb[5].mxu1  ;;  %v779_v2 = vsel %vm771_vm9, %v551_v38, -1e+30 }
 0x2fe   :  { %v554_v40 = vpop.f32.mrb[6].mxu1  ;;  %v792_v4 = vsel %vm785_vm4, %v779_v2, -inf }
 0x2ff   :  { %v1491_v41 = vpop.f32.mrb[7].mxu1  ;;  %v780_v5 = vsel %vm772_vm10, %v554_v40, -1e+30 }
 0x300   :  { %993 = vrot.lane.b32.xlu1 %v2016_v51, %s1821_s4  ;;  %v795_v6 = vsel %vm785_vm4, %v780_v5, -inf }
 0x30c   :  { %v597_v44 = vpop.f32.mrb[12].mxu0 }
 0x30d   :  { %v1498_v45 = vpop.f32.mrb[13].mxu0  ;;  %v781_v7 = vsel %vm773_vm11, %v597_v44, -1e+30 }
 0x30e   :  { %v600_v46 = vpop.f32.mrb[14].mxu0  ;;  %v798_v33 = vsel %vm785_vm4, %v781_v7, -inf }
 0x30f   :  { %v2049_v47 = vsel %vm774_vm6, %v600_v46, -1e+30  ;;  %v1499_v48 = vpop.f32.mrb[15].mxu0 }
 0x310   :  { %v801_v8 = vsel %vm785_vm4, %v2049_v47, -inf }
 0x31c   :  { %v643_v57 = vpop.f32.mrb[8].mxu1 }
 0x31d   :  { %v783_v60 = vsel %vm775_vm7, %v643_v57, -1e+30  ;;  %v1506_v61 = vpop.f32.mrb[9].mxu1 }
 0x31e   :  { %v646_v62 = vpop.f32.mrb[10].mxu1  ;;  %v804_v9 = vsel %vm785_vm4, %v783_v60, -inf }
 0x31f   :  { %v2056_v63 = vsel %vm776_vm8, %v646_v62, -1e+30  ;;  %v1507_v1 = vpop.f32.mrb[11].mxu1 }
 0x320   :  { %v807_v10 = vsel %vm785_vm4, %v2056_v63, -inf }
 0x324   :  { %793 = vmax.xlane.f32.xlu1 %v792_v4 }
 0x328   :  { %796 = vmax.xlane.f32.xlu1 %v795_v6 }
 0x32c   :  { %799 = vmax.xlane.f32.xlu1 %v798_v33 }
 0x330   :  { %802 = vmax.xlane.f32.xlu1 %v801_v8 }
 0x334   :  { %805 = vmax.xlane.f32.xlu1 %v804_v9 }
 0x338   :  { %808 = vmax.xlane.f32.xlu1 %v807_v10 }
 0x349   :  { %1103 = vrot.lane.b32.xlu1 %v2016_v51, %s1813_s14 }
 0x37c   :  { %v788_v11 = vpop.xlane.xlu1 %787 }
 0x37d   :  { %v810_v12 = vsub.f32 %v777_v29, %v788_v11 }
 0x37e   :  { %v791_v13 = vpop.xlane.xlu0 %790 }
 0x37f   :  { %v818_v14 = vmul.f32 1.442695, %v810_v12  ;;  %v811_v15 = vsub.f32 %v778_v36, %v791_v13 }
 0x380   :  { %v994_v23 = vpop.permute.xlu1 %993 }
 0x381   :  { %1612 = vpow2.f32 %v818_v14  ;;  %v820_v16 = vmul.f32 1.442695, %v811_v15 }
 0x383   :  { %1614 = vpow2.f32 %v820_v16 }
 0x38b   :  { %v1613_v17 = vpop.eup %1612 }
 0x38c   :  { %v834_v18 = vsel %vm785_vm4, %v1613_v17, 0.0 }
 0x38d   :  { %v1615_v21 = vpop.eup %1614  ;;  %835 = vadd.xlane.f32.xlu1 %v834_v18 }
 0x38e   :  { %v837_v22 = vsel %vm785_vm4, %v1615_v21, 0.0 }
 0x391   :  { %838 = vadd.xlane.f32.xlu1 %v837_v22 }
 0x3b1   :  { %v794_v24 = vpop.xlane.xlu1 %793 }
 0x3b2   :  { %v812_v25 = vsub.f32 %v779_v2, %v794_v24 }
 0x3b4   :  { %v822_v26 = vmul.f32 1.442695, %v812_v25 }
 0x3b5   :  { %v797_v27 = vpop.xlane.xlu1 %796 }
 0x3b6   :  { %1616 = vpow2.f32 %v822_v26  ;;  %v813_v29 = vsub.f32 %v780_v5, %v797_v27  ;;  %v1605_v26 = vld [vmem:[#allocation11 + $0x8] sm:$0xff]  }
 0x3b7   :  { %1517 = vmatpush3.bf16.msra.mxu1 %v1605_v26 }
 0x3b8   :  { %v824_v32 = vmul.f32 1.442695, %v813_v29  ;;  %1528 = vmatprep.subr.bf16.mxu1 %v1818_v0 }
 0x3b9   :  { %v800_v34 = vpop.xlane.xlu1 %799 }
 0x3ba   :  { %1618 = vpow2.f32 %v824_v32  ;;  %v814_v35 = vsub.f32 %v781_v7, %v800_v34  ;;  %v1606_v34 = vld [vmem:[#allocation11 + $0x10] sm:$0xff]  }
 0x3bc   :  { %v826_v36 = vmul.f32 1.442695, %v814_v35 }
 0x3bd   :  { %v803_v37 = vpop.xlane.xlu1 %802 }
 0x3be   :  { %1620 = vpow2.f32 %v826_v36  ;;  %v815_v31 = vsub.f32 %v2049_v47, %v803_v37  ;;  %v1607_v37 = vld [vmem:[#allocation11 + $0x18] sm:$0xff]  }
 0x3c0   :  { %v1617_v38 = vpop.eup %1616  ;;  %v828_v39 = vmul.f32 1.442695, %v815_v31 }
 0x3c1   :  { %v806_v40 = vpop.xlane.xlu1 %805  ;;  %v840_v41 = vsel %vm785_vm4, %v1617_v38, 0.0 }
 0x3c2   :  { %1622 = vpow2.f32 %v828_v39  ;;  %v816_v42 = vsub.f32 %v783_v60, %v806_v40  ;;  %841 = vadd.xlane.f32.xlu1 %v840_v41  ;;  %v1608_v40 = vld [vmem:[#allocation11 + $0x20] sm:$0xff]  }
 0x3c4   :  { %v1619_v43 = vpop.eup %1618  ;;  %v830_v44 = vmul.f32 1.442695, %v816_v42 }
 0x3c5   :  { %v809_v45 = vpop.xlane.xlu1 %808  ;;  %v843_v46 = vsel %vm785_vm4, %v1619_v43, 0.0 }
 0x3c6   :  { %1624 = vpow2.f32 %v830_v44  ;;  %v817_v48 = vsub.f32 %v2056_v63, %v809_v45  ;;  %844 = vadd.xlane.f32.xlu1 %v843_v46 }
 0x3c8   :  { %v1621_v49 = vpop.eup %1620  ;;  %v832_v50 = vmul.f32 1.442695, %v817_v48  ;;  %v1610_v48 = vld [vmem:[#allocation11 + $0x30] sm:$0xff]  }
 0x3c9   :  { %v846_v47 = vsel %vm785_vm4, %v1621_v49, 0.0  ;;  %v1104_v59 = vpop.permute.xlu1 %1103 }
 0x3ca   :  { %1626 = vpow2.f32 %v832_v50  ;;  %847 = vadd.xlane.f32.xlu1 %v846_v47  ;;  %v1611_v47 = vld [vmem:[#allocation11 + $0x38] sm:$0xff]  }
 0x3cc   :  { %v1623_v52 = vpop.eup %1622 }
 0x3cd   :  { %v849_v53 = vsel %vm785_vm4, %v1623_v52, 0.0 }
 0x3ce   :  { %850 = vadd.xlane.f32.xlu1 %v849_v53 }
 0x3d0   :  { %v1625_v54 = vpop.eup %1624 }
 0x3d1   :  { %v852_v55 = vsel %vm785_vm4, %v1625_v54, 0.0 }
 0x3d2   :  { %853 = vadd.xlane.f32.xlu1 %v852_v55 }
 0x3d4   :  { %v1627_v56 = vpop.eup %1626 }
 0x3d5   :  { %v855_v57 = vsel %vm785_vm4, %v1627_v56, 0.0 }
 0x3d6   :  { %856 = vadd.xlane.f32.xlu1 %v855_v57 }
 0x3e7   :  { %1213 = vrot.lane.b32.xlu1 %v2016_v51, %s1822_s5 }
 0x41a   :  { %v836_v60 = vpop.xlane.xlu1 %835 }
 0x41b   :  { %1628 = vrcp.f32 %v836_v60 }
 0x41e   :  { %v839_v61 = vpop.xlane.xlu1 %838 }
 0x41f   :  { %1630 = vrcp.f32 %v839_v61  ;;  %v1385_v61 = vld [vmem:[%s2143_s9] ss:$0 sm:$0xff] }
 0x425   :  { %v1629_v62 = vpop.eup %1628 }
 0x426   :  { %v866_v1 = vmul.f32 %v1629_v62, %v1613_v17 }
 0x429   :  { %v1631_v63 = vpop.eup %1630 }
 0x42a   :  { %v867_v2 = vmul.f32 %v1631_v63, %v1615_v21 }
 0x42c   :  { %v874_v3 = vpack.c.bf16 %v867_v2, %v866_v1 }
 0x42e   :  { %1511 = vmatmul.mubr.msk.bf16.vlgmr.msra.gmra.mrb[16].mxu0 %vm785_vm4, %v874_v3 }
 0x42f   :  { %1523 = vmatpush3.bf16.msra.mxu0 %v994_v23  ;;  %1524 = vmatprep.mubr.msk.bf16.mxu0 %vm1819_vm0, %v1818_v0 }
 0x430   :  { %1536 = vmatprep.subr.bf16.mxu0 %v1818_v0 }
 0x44f   :  { %v842_v51 = vpop.xlane.xlu1 %841 }
 0x450   :  { %1632 = vrcp.f32 %v842_v51 }
 0x453   :  { %v845_v4 = vpop.xlane.xlu1 %844 }
 0x454   :  { %1634 = vrcp.f32 %v845_v4 }
 0x457   :  { %v848_v5 = vpop.xlane.xlu1 %847 }
 0x458   :  { %1636 = vrcp.f32 %v848_v5  ;;  %v1353_v5 = vld [vmem:[%s2137_s3] ss:$0 sm:$0xff]  ;;  %s1823_s3 = smov [#allocation13]  }
 0x459   :  { %s1338_s9 = sshll.u32 %s1823_s3, 4  ;;  %s1339_s9 = int_to_ptr.vmem [resolvable:$true] %s1338_s9 }
 0x45a   :  { %v1633_v7 = vpop.eup %1632  ;;  %s1776_s17 = scalar_lea.vmem %s1339_s9, 256  ;;  %p1781_p7 = scmp.lt.s32.totalorder %s1339_s9, %s1339_s9 }
 0x45b   :  { %v851_v6 = vpop.xlane.xlu1 %850  ;;  %v868_v8 = vmul.f32 %v1633_v7, %v1617_v38  ;;  %v203_v7 = vadd.f32 %v1353_v5, %v1999_v28  ;;  %p1777_p6 = scmp.ne.s32.totalorder %s1339_s9, %s1776_s17  ;;  %p1782_p8 = scmp.lt.s32.totalorder %s1776_s17, %s1776_s17 }
 0x45c   :  { %1638 = vrcp.f32 %v851_v6 }
 0x45d   :  { %p1783_p9 = por %p1782_p8, %p1781_p7 }
 0x45e   :  { %v1635_v33 = vpop.eup %1634 }
 0x45f   :  { %v869_v9 = vmul.f32 %v1635_v33, %v1619_v43  ;;  %v854_v10 = vpop.xlane.xlu1 %853  ;;  %v1609_v43 = vld [vmem:[#allocation11 + $0x28] sm:$0xff]   ;;  %p1784_p10 = pnand %p1783_p9, %p1777_p6 }
 0x460   :  { %1640 = vrcp.f32 %v854_v10  ;;  %v206_v10 = vadd.f32 %v1353_v5, %v2001_v30 }
 0x461   :  { %v875_v11 = vpack.c.bf16 %v869_v9, %v868_v8 }
 0x462   :  { %v1637_v13 = vpop.eup %1636 }
 0x463   :  { %1525 = vmatmul.mubr.msk.bf16.vlgmr.msra.gmra.mrb[20].mxu0 %vm785_vm4, %v875_v11  ;;  %v857_v12 = vpop.xlane.xlu1 %856  ;;  %v870_v15 = vmul.f32 %v1637_v13, %v1621_v49  ;;  %v1323_v13 = vmul.f32 0.3, %v1985_v19 }
 0x464   :  { %1537 = vmatpush3.bf16.msra.mxu0 %v1104_v59  ;;  %1642 = vrcp.f32 %v857_v12  ;;  %1538 = vmatprep.mubr.msk.bf16.mxu0 %vm1819_vm0, %v1818_v0 }
 0x465   :  { %1550 = vmatprep.subr.bf16.mxu0 %v1818_v0 }
 0x466   :  { %v1639_v14 = vpop.eup %1638 }
 0x467   :  { %v871_v16 = vmul.f32 %v1639_v14, %v1623_v52  ;;  %v1214_v18 = vpop.permute.xlu1 %1213  ;;  %v1325_v14 = vmul.f32 0.3, %v203_v7 }
 0x469   :  { %v876_v17 = vpack.c.bf16 %v871_v16, %v870_v15  ;;  %v1324_v15 = vmul.f32 0.3, %v1987_v20  ;;  %v1326_v16 = vmul.f32 0.3, %v206_v10 }
 0x46a   :  { %v1641_v21 = vpop.eup %1640 }
 0x46b   :  { %1539 = vmatmul.mubr.msk.bf16.vlgmr.msra.gmra.mrb[24].mxu0 %vm785_vm4, %v876_v17  ;;  %v872_v23 = vmul.f32 %v1641_v21, %v1625_v54  ;;  %v1328_v28 = vadd.f32 %v1326_v16, %v1324_v15 }
 0x46c   :  { %1551 = vmatpush3.bf16.msra.mxu0 %v1214_v18  ;;  %1552 = vmatprep.mubr.msk.bf16.mxu0 %vm1819_vm0, %v1818_v0  ;;  %v1327_v18 = vadd.f32 %v1325_v14, %v1323_v13 }
 0x46e   :  { %v1643_v22 = vpop.eup %1642 }
 0x46f   :  { %v873_v24 = vmul.f32 %v1643_v22, %v1627_v56 }
 0x471   :  { %v877_v25 = vpack.c.bf16 %v873_v24, %v872_v23 }
 0x473   :  { %1553 = vmatmul.mubr.msk.bf16.vlgmr.msra.gmra.mrb[28].mxu0 %vm785_vm4, %v877_v25 }
 0x501   :  { %v916_v27 = vpop.f32.mrb[16].mxu0 }
 0x502   :  { %v1512_v29 = vpop.f32.mrb[17].mxu0 }
 0x503   :  { %v919_v32 = vpop.f32.mrb[18].mxu0 }
 0x504   :  { %v923_v35 = vpack.c.bf16 %v919_v32, %v916_v27  ;;  %v1513_v36 = vpop.f32.mrb[19].mxu0 }
 0x506   :  { %1519 = vmatmul.mubr.msk.bf16.vlgmr.msra.gmra.mrb[12].mxu1 %vm466_vm2, %v923_v35 }
 0x507   :  { %1529 = vmatpush3.bf16.msra.mxu1 %v1606_v34  ;;  %1532 = vmatprep.mubr.msk.bf16.mxu1 %vm1819_vm0, %v1818_v0 }
 0x508   :  { %1530 = vmatprep.subr.bf16.mxu1 %v1818_v0 }
 0x50b   :  { %1531 = vmatpush3.bf16.msra.mxu1 %v1607_v37 }
 0x50c   :  { %1542 = vmatprep.subr.bf16.mxu1 %v1818_v0 }
 0x536   :  { %v1033_v31 = vpop.f32.mrb[20].mxu0 }
 0x537   :  { %v1526_v38 = vpop.f32.mrb[21].mxu0 }
 0x538   :  { %v1036_v39 = vpop.f32.mrb[22].mxu0 }
 0x539   :  { %v1040_v41 = vpack.c.bf16 %v1036_v39, %v1033_v31  ;;  %v1527_v42 = vpop.f32.mrb[23].mxu0 }
 0x53b   :  { %1533 = vmatmul.mubr.msk.bf16.vlgmr.msra.gmra.mrb[16].mxu1 %vm466_vm2, %v1040_v41 }
 0x53c   :  { %1543 = vmatpush3.bf16.msra.mxu1 %v1608_v40  ;;  %1546 = vmatprep.mubr.msk.bf16.mxu1 %vm1819_vm0, %v1818_v0 }
 0x53d   :  { %1544 = vmatprep.subr.bf16.mxu1 %v1818_v0 }
 0x53e   :  { %v1143_v44 = vpop.f32.mrb[24].mxu0 }
 0x53f   :  { %v1540_v45 = vpop.f32.mrb[25].mxu0 }
 0x540   :  { %v1146_v46 = vpop.f32.mrb[26].mxu0  ;;  %1545 = vmatpush3.bf16.msra.mxu1 %v1609_v43 }
 0x541   :  { %v1150_v49 = vpack.c.bf16 %v1146_v46, %v1143_v44  ;;  %v1541_v50 = vpop.f32.mrb[27].mxu0  ;;  %1556 = vmatprep.subr.bf16.mxu1 %v1818_v0 }
 0x543   :  { %1547 = vmatmul.mubr.msk.bf16.vlgmr.msra.gmra.mrb[20].mxu1 %vm466_vm2, %v1150_v49 }
 0x544   :  { %1557 = vmatpush3.bf16.msra.mxu1 %v1610_v48  ;;  %1560 = vmatprep.mubr.msk.bf16.mxu1 %vm1819_vm0, %v1818_v0 }
 0x545   :  { %1558 = vmatprep.subr.bf16.mxu1 %v1818_v0 }
 0x546   :  { %v1253_v52 = vpop.f32.mrb[28].mxu0 }
 0x547   :  { %v1554_v53 = vpop.f32.mrb[29].mxu0 }
 0x548   :  { %v1256_v54 = vpop.f32.mrb[30].mxu0  ;;  %1559 = vmatpush3.bf16.msra.mxu1 %v1611_v47 }
 0x549   :  { %v1260_v55 = vpack.c.bf16 %v1256_v54, %v1253_v52  ;;  %v1555_v56 = vpop.f32.mrb[31].mxu0 }
 0x54b   :  { %1561 = vmatmul.mubr.msk.bf16.vlgmr.msra.gmra.mrb[24].mxu1 %vm466_vm2, %v1260_v55 }
 0x5d9   :  { %v977_v57 = vpop.f32.mrb[12].mxu1 }
 0x5da   :  { %v1520_v58 = vpop.f32.mrb[13].mxu1  ;;  %v990_v62 = vadd.f32 %v1385_v61, %v977_v57 }
 0x5db   :  { %v980_v59 = vpop.f32.mrb[14].mxu1 }
 0x5dc   :  { %v1521_v60 = vpop.f32.mrb[15].mxu1  ;;  %v991_v1 = vadd.f32 %v1385_v61, %v980_v59 }
 0x60e   :  { %v1094_v63 = vpop.f32.mrb[16].mxu1 }
 0x60f   :  { %v1101_v0 = vadd.f32 %v1094_v63, %v990_v62  ;;  %v1534_v2 = vpop.f32.mrb[17].mxu1 }
 0x610   :  { %v1097_v3 = vpop.f32.mrb[18].mxu1 }
 0x611   :  { %v1102_v51 = vadd.f32 %v1097_v3, %v991_v1  ;;  %v1535_v4 = vpop.f32.mrb[19].mxu1 }
 0x616   :  { %v1204_v6 = vpop.f32.mrb[20].mxu1 }
 0x617   :  { %v1211_v33 = vadd.f32 %v1204_v6, %v1101_v0  ;;  %v1548_v8 = vpop.f32.mrb[21].mxu1 }
 0x618   :  { %v1207_v9 = vpop.f32.mrb[22].mxu1 }
 0x619   :  { %v1212_v11 = vadd.f32 %v1207_v9, %v1102_v51  ;;  %v1549_v12 = vpop.f32.mrb[23].mxu1 }
 0x61e   :  { %v1314_v17 = vpop.f32.mrb[24].mxu1 }
 0x61f   :  { %v1321_v21 = vadd.f32 %v1314_v17, %v1211_v33  ;;  %v1562_v22 = vpop.f32.mrb[25].mxu1 }
 0x620   :  { %v1317_v23 = vpop.f32.mrb[26].mxu1 }
 0x621   :  { %v1329_v24 = vadd.f32 %v1327_v18, %v1321_v21  ;;  %v1322_v25 = vadd.f32 %v1317_v23, %v1212_v11  ;;  %v1563_v26 = vpop.f32.mrb[27].mxu1 }
 0x623   :  { %1331 = vst [vmem:[#allocation13] sm:$0xff] %v1329_v24  ;;  %v1330_v30 = vadd.f32 %v1328_v28, %v1322_v25 }
 0x625   :  { %1332 = vst [vmem:[#allocation13 + $0x8] sm:$0xff] %v1330_v30 }
 0x626   :  { %1787 = shalt.err (!%p1784_p10)
}
 0x627   :  { %s1788_s16 = scalar_lea.hbm %s2144_s10, 256 }
 0x628   :  { %p1789_p11 = scmp.ne.s32.totalorder %s2144_s10, %s1788_s16  ;;  %p1792_p12 = scmp.lt.u32.totalorder %s1788_s16, %s2144_s10 }
 0x62a   :  { %p1794_p13 = pnand %p1792_p12, %p1789_p11 }
 0x62c   :  { %1797 = shalt.err (!%p1794_p13)
}
 0x62d   :  { %1344 = dma.vmem_to_hbm [thread:$0]  %s1339_s9, 256, %s2144_s10, [#allocation4], %s1809_s23, %s1809_s23, %s1810_s24  }
 0x62e   :  { %1806 = dma.done.wait [#allocation4], 256  }
 0x62f   :  { %1807 = vsyncadd [#allocation4], 4294967040 }
 0x630   :  { %1348 = vsyncpa [#allocation3], 1 }
 0x631   :  { %1349 = vsyncpa [#allocation6], 1 }
 0x632   :  { %1350 = vsyncpa [#allocation9], 1 }
 0x633   :  { %1351 = vsyncpa [#allocation12], 1 }
 0x634   :  { %1352 = vsyncpa [#allocation4], 1 }

</bundles_post_ra>
